<compile_context>
chip_gen: v7x
topology: tpu7x:2x2x1
jax: 0.10.0
libtpu: 0.0.40
codegen_flags: <defaults>
</compile_context>

<pallas_src>
import jax
import jax.numpy as jnp
from jax.experimental import pallas as pl
from jax.experimental.pallas import tpu as pltpu


def coord_reg_kernel(img_ref, wbT_ref, bb_ref, whmT_ref, grid_ref,
                     hm_ref, coord_ref):
    # img_ref:   (Cin, BT*HW)   batch tile of images, batch folded into lanes
    # wbT_ref:   (2N, Cin)      stand-in backbone 1x1 conv weight (transposed)
    # bb_ref:    (2N, 1)        stand-in backbone bias (broadcasts over lanes)
    # whmT_ref:  (N, 2N)        hm_conv 1x1 conv weight (transposed, bias=False)
    # grid_ref:  (2, HW)        normalized coord grid, row 0 = x, row 1 = y
    # hm_ref:    (1, N*BT, HW)  heatmap slab, rows ordered (n-major, b-minor)
    # coord_ref: (1, N*BT, 2)   coordinates (x, y), same row ordering
    N = whmT_ref.shape[0]
    HW = grid_ref.shape[1]
    BT = img_ref.shape[1] // HW

    # --- stand-in backbone: one wide 1x1 conv + bias + ReLU (single MXU dot) ---
    feat = jnp.dot(wbT_ref[...], img_ref[...],
                   preferred_element_type=jnp.float32)          # [2N, BT*HW] f32
    feat = jnp.maximum(feat + bb_ref[...], 0.0)

    # --- hm_conv: 1x1 conv, no bias (single MXU dot, bf16 operands) ---
    logits = jnp.dot(whmT_ref[...], feat.astype(whmT_ref.dtype),
                     preferred_element_type=jnp.float32)        # [N, BT*HW] f32

    # --- dsntnn.flat_softmax per (n, b) over the spatial (lane) axis ---
    # Row-major reshape puts row = n*BT + b, col = hw  (no-op when BT == 1).
    logits = logits.reshape(N * BT, HW)
    m = jnp.max(logits, axis=-1, keepdims=True)
    e = jnp.exp(logits - m)
    s = jnp.sum(e, axis=-1, keepdims=True)
    hm = e * pl.reciprocal(s, approx=False)                     # [N*BT, HW] f32
    hm_ref[0] = hm.astype(hm_ref.dtype)                         # one dense store

    # --- dsntnn.dsnt: two VPU multiplies + two lane reductions (no 3-D bcast) ---
    g = grid_ref[...]                                           # [2, HW] f32
    cx = jnp.sum(hm * g[0:1, :], axis=-1, keepdims=True)        # [N*BT, 1]
    cy = jnp.sum(hm * g[1:2, :], axis=-1, keepdims=True)        # [N*BT, 1]
    coord_ref[0] = jnp.concatenate([cx, cy], axis=-1).astype(coord_ref.dtype)


def make_params(key, n_ch, n_locations_global):
    """Deterministic parameter init (shapes match the PyTorch module's convs)."""
    n2 = n_locations_global * 2
    k1, k2, k3 = jax.random.split(key, 3)
    w_backbone = (jax.random.normal(k1, (n_ch, n2), jnp.float32)
                  * (1.0 / jnp.sqrt(n_ch)))
    b_backbone = 0.01 * jax.random.normal(k2, (1, n2), jnp.float32)
    # nn.Conv2d(2N, N, kernel_size=1, bias=False) -> weight [N, 2N, 1, 1];
    # stored as [2N, N]; the wrapper transposes into the kernel layout.
    w_hm = (jax.random.normal(k3, (n2, n_locations_global), jnp.float32)
            * (1.0 / jnp.sqrt(n2)))
    return {"w_backbone": w_backbone, "b_backbone": b_backbone, "w_hm": w_hm}


def normalized_grid(H, W):
    """dsntnn.normalized_linspace convention: (2*i + 1 - L) / L, rows (x, y)."""
    xs = (2.0 * jnp.arange(W, dtype=jnp.float32) - (W - 1)) / W
    ys = (2.0 * jnp.arange(H, dtype=jnp.float32) - (H - 1)) / H
    gx = jnp.tile(xs, H)            # p = h*W + w  ->  x varies fastest
    gy = jnp.repeat(ys, W)
    return jnp.stack([gx, gy], axis=0)           # [2, HW]


def _pick_batch_tile(B, max_bt=8):
    """Largest divisor of B that is <= max_bt and keeps the grid length >= 2,
    so v7x's second TensorCore gets work and the BlockSpec pipeline overlaps.
    Falls back to BT=1 (grid = B) for prime / tiny batches."""
    upper = max(1, min(max_bt, B // 2))
    for bt in range(upper, 0, -1):
        if B % bt == 0:
            return bt
    return 1


def coord_regression_forward(img_nchw, params, *,
                             compute_dtype=jnp.bfloat16,
                             heatmap_dtype=jnp.float32,
                             max_batch_tile=8):
    """Returns (global_coords [B,N,2], global_heatmaps [B,N,H,W])."""
    B, C, H, W = img_nchw.shape
    HW = H * W
    n2, N = params["w_hm"].shape

    BT = _pick_batch_tile(B, max_batch_tile)
    T = B // BT
    assert T * BT == B

    # Lane-dense, bf16 matmul operands (halves the dominant HBM read).
    # NCHW -> [C, B*HW] is one XLA-side transpose, outside the kernel.
    img_lanes = (img_nchw.reshape(B, C, HW)
                 .transpose(1, 0, 2)
                 .reshape(C, B * HW)
                 .astype(compute_dtype))
    wbT = params["w_backbone"].T.astype(compute_dtype)      # [2N, Cin]
    bb = params["b_backbone"].T.astype(jnp.float32)         # [2N, 1]
    whmT = params["w_hm"].T.astype(compute_dtype)           # [N, 2N]
    grid2 = normalized_grid(H, W)                           # [2, HW] f32

    cd_sz = jnp.dtype(compute_dtype).itemsize
    hm_sz = jnp.dtype(heatmap_dtype).itemsize

    # Advisory cost estimate for XLA's scheduler around the custom call.
    flops = 2 * B * HW * (C * n2 + n2 * N)
    transcendentals = B * N * HW
    bytes_accessed = (B * C * HW * cd_sz + n2 * C * cd_sz + n2 * 4
                      + N * n2 * cd_sz + 2 * HW * 4
                      + B * N * HW * hm_sz + B * N * 2 * 4)
    cost = pl.CostEstimate(flops=flops, transcendentals=transcendentals,
                           bytes_accessed=bytes_accessed)

    # Explicit scoped-VMEM limit (v5e defaults to only 16 MiB): one buffer's
    # worth of every block, x4 headroom for double-buffering + scratch,
    # clamped to a value that is safe on all generations (<= 48 MiB).
    step_bytes = (C * BT * HW * cd_sz + n2 * C * cd_sz + n2 * 4
                  + N * n2 * cd_sz + 2 * HW * 4
                  + N * BT * HW * hm_sz + N * BT * 2 * 4)
    vmem_limit = int(min(max(4 * step_bytes, 16 * 2**20), 48 * 2**20))

    hm_tiles, coord_tiles = pl.pallas_call(
        coord_reg_kernel,
        out_shape=(
            jax.ShapeDtypeStruct((T, N * BT, HW), heatmap_dtype),
            jax.ShapeDtypeStruct((T, N * BT, 2), jnp.float32),
        ),
        grid_spec=pltpu.PrefetchScalarGridSpec(
            num_scalar_prefetch=0,
            grid=(T,),
            in_specs=[
                pl.BlockSpec((C, BT * HW), lambda t: (0, t)),
                pl.BlockSpec((n2, C), lambda t: (0, 0)),
                pl.BlockSpec((n2, 1), lambda t: (0, 0)),
                pl.BlockSpec((N, n2), lambda t: (0, 0)),
                pl.BlockSpec((2, HW), lambda t: (0, 0)),
            ],
            out_specs=[
                pl.BlockSpec((1, N * BT, HW), lambda t: (t, 0, 0)),
                pl.BlockSpec((1, N * BT, 2), lambda t: (t, 0, 0)),
            ],
        ),
        compiler_params=pltpu.CompilerParams(
            dimension_semantics=("parallel",),
            vmem_limit_bytes=vmem_limit),
        cost_estimate=cost,
    )(img_lanes, wbT, bb, whmT, grid2)

    # Slab rows are (n-major, b-minor) -> reorder to [B, N, ...] outside.
    heatmaps = (hm_tiles.reshape(T, N, BT, H, W)
                .transpose(0, 2, 1, 3, 4)
                .reshape(B, N, H, W).astype(jnp.float32))
    coords = (coord_tiles.reshape(T, N, BT, 2)
              .transpose(0, 2, 1, 3)
              .reshape(B, N, 2))
    return coords, heatmaps


def reference_forward(img_nchw, params, compute_dtype=jnp.bfloat16):
    """Pure-JAX reference mirroring the kernel's bf16 matmul-I/O / f32 math."""
    B, C, H, W = img_nchw.shape
    HW = H * W
    N = params["w_hm"].shape[1]
    x = img_nchw.reshape(B, C, HW).astype(compute_dtype)                 # [B,C,HW]
    wb = params["w_backbone"].astype(compute_dtype)                      # [C,2N]
    feat = jnp.einsum("cd,bcp->bdp", wb, x,
                      preferred_element_type=jnp.float32)                # [B,2N,HW]
    feat = jnp.maximum(feat + params["b_backbone"].T[None], 0.0)
    whm = params["w_hm"].astype(compute_dtype)                           # [2N,N]
    logits = jnp.einsum("dn,bdp->bnp", whm, feat.astype(compute_dtype),
                        preferred_element_type=jnp.float32)              # [B,N,HW]
    logits = logits - jnp.max(logits, axis=-1, keepdims=True)
    e = jnp.exp(logits)
    hm = e / jnp.sum(e, axis=-1, keepdims=True)
    coords = jnp.einsum("bnp,kp->bnk", hm, normalized_grid(H, W))
    return coords, hm.reshape(B, N, H, W)


if __name__ == "__main__":
    B, n_ch, H, W = 2, 4, 16, 16
    n_locations_global = 4

    key = jax.random.PRNGKey(0)
    k_img, k_par = jax.random.split(key)
    img = jax.random.normal(k_img, (B, n_ch, H, W), jnp.float32)
    params = make_params(k_par, n_ch, n_locations_global)

    coords, heatmaps = coord_regression_forward(img, params)
    coords, heatmaps = jax.block_until_ready((coords, heatmaps))

    # sanity check against a pure-JAX reference with the same bf16 matmul I/O
    ref_coords, ref_hm = reference_forward(img, params)
    assert coords.shape == (B, n_locations_global, 2)
    assert heatmaps.shape == (B, n_locations_global, H, W)
    assert jnp.allclose(coords, ref_coords, atol=2e-5, rtol=2e-5)
    assert jnp.allclose(heatmaps, ref_hm, atol=2e-5, rtol=2e-5)
    # heatmaps sum to 1 over the spatial dims (softmax property, f32 math)
    assert jnp.allclose(heatmaps.sum(axis=(-1, -2)), 1.0, atol=1e-5)

    print("KERNEL_OK")
</pallas_src>

<mosaic_0001>
module attributes {stable_mosaic.version = 11 : i64} {
  func.func @coord_reg_kernel(%arg0: i32, %arg1: memref<4x256xbf16, #tpu.memory_space<vmem>>, %arg2: memref<8x4xbf16, #tpu.memory_space<vmem>>, %arg3: memref<8x1xf32, #tpu.memory_space<vmem>>, %arg4: memref<4x8xbf16, #tpu.memory_space<vmem>>, %arg5: memref<2x256xf32, #tpu.memory_space<vmem>>, %arg6: memref<1x4x256xf32, #tpu.memory_space<vmem>>, %arg7: memref<1x4x2xf32, #tpu.memory_space<vmem>>) attributes {dimension_semantics = [#tpu.dimension_semantics<parallel>], iteration_bounds = array<i64: 2>, scalar_prefetch = 0 : i64, scratch_operands = 0 : i64, tpu.core_type = #tpu.core_type<tc>, window_params = [{transform_indices = @transform_0, window_bounds = array<i64: 4, 256>}, {pipeline_mode = #tpu.pipeline_mode<synchronous>, transform_indices = @transform_1, window_bounds = array<i64: 8, 4>}, {pipeline_mode = #tpu.pipeline_mode<synchronous>, transform_indices = @transform_2, window_bounds = array<i64: 8, 1>}, {pipeline_mode = #tpu.pipeline_mode<synchronous>, transform_indices = @transform_3, window_bounds = array<i64: 4, 8>}, {pipeline_mode = #tpu.pipeline_mode<synchronous>, transform_indices = @transform_4, window_bounds = array<i64: 2, 256>}, {transform_indices = @transform_5, window_bounds = array<i64: 1, 4, 256>}, {transform_indices = @transform_6, window_bounds = array<i64: 1, 4, 2>}]} {
    %c0 = arith.constant 0 : index
    %c0_0 = arith.constant 0 : index
    %0 = vector.load %arg2[%c0, %c0_0] : memref<8x4xbf16, #tpu.memory_space<vmem>>, vector<8x4xbf16>
    %c0_1 = arith.constant 0 : index
    %c0_2 = arith.constant 0 : index
    %1 = vector.load %arg1[%c0_1, %c0_2] : memref<4x256xbf16, #tpu.memory_space<vmem>>, vector<4x256xbf16>
    %cst = arith.constant dense<0.000000e+00> : vector<8x256xf32>
    %2 = tpu.matmul %0, %1, %cst {dimension_numbers = #tpu.dot_dimension_numbers<[1], [0], [0], [1], [0, 0, 1, 1], [], []>} : vector<8x4xbf16>, vector<4x256xbf16>, vector<8x256xf32> -> vector<8x256xf32>
    %c0_3 = arith.constant 0 : index
    %c0_4 = arith.constant 0 : index
    %3 = vector.load %arg3[%c0_3, %c0_4] : memref<8x1xf32, #tpu.memory_space<vmem>>, vector<8x1xf32>
    %4 = vector.broadcast %3 : vector<8x1xf32> to vector<8x256xf32>
    %5 = arith.addf %2, %4 : vector<8x256xf32>
    %cst_5 = arith.constant 0.000000e+00 : f32
    %6 = vector.broadcast %cst_5 : f32 to vector<8x256xf32>
    %7 = arith.maximumf %5, %6 : vector<8x256xf32>
    %c0_6 = arith.constant 0 : index
    %c0_7 = arith.constant 0 : index
    %8 = vector.load %arg4[%c0_6, %c0_7] : memref<4x8xbf16, #tpu.memory_space<vmem>>, vector<4x8xbf16>
    %9 = arith.truncf %7 : vector<8x256xf32> to vector<8x256xbf16>
    %cst_8 = arith.constant dense<0.000000e+00> : vector<4x256xf32>
    %10 = tpu.matmul %8, %9, %cst_8 {dimension_numbers = #tpu.dot_dimension_numbers<[1], [0], [0], [1], [0, 0, 1, 1], [], []>} : vector<4x8xbf16>, vector<8x256xbf16>, vector<4x256xf32> -> vector<4x256xf32>
    %cst_9 = arith.constant dense<0xFF800000> : vector<4xf32>
    %11 = vector.multi_reduction <maximumf>, %10, %cst_9 [1] : vector<4x256xf32> to vector<4xf32>
    %12 = vector.shape_cast %11 : vector<4xf32> to vector<4x1xf32>
    %13 = vector.broadcast %12 : vector<4x1xf32> to vector<4x256xf32>
    %14 = arith.subf %10, %13 : vector<4x256xf32>
    %15 = math.exp %14 : vector<4x256xf32>
    %cst_10 = arith.constant dense<0.000000e+00> : vector<4xf32>
    %16 = vector.multi_reduction <add>, %15, %cst_10 [1] : vector<4x256xf32> to vector<4xf32>
    %17 = vector.shape_cast %16 : vector<4xf32> to vector<4x1xf32>
    %18 = tpu.reciprocal %17 : vector<4x1xf32> -> vector<4x1xf32>
    %19 = vector.broadcast %18 : vector<4x1xf32> to vector<4x256xf32>
    %20 = arith.mulf %15, %19 : vector<4x256xf32>
    %c0_11 = arith.constant 0 : index
    %c0_12 = arith.constant 0 : index
    %c0_13 = arith.constant 0 : index
    %21 = vector.load %arg6[%c0_11, %c0_12, %c0_13] : memref<1x4x256xf32, #tpu.memory_space<vmem>>, vector<1x4x256xf32>
    %22 = vector.shape_cast %21 : vector<1x4x256xf32> to vector<4x256xf32>
    %23 = vector.shape_cast %20 : vector<4x256xf32> to vector<1x4x256xf32>
    tpu.vector_store %arg6[%c0_11, %c0_12, %c0_13], %23 {strides = array<i32>} : memref<1x4x256xf32, #tpu.memory_space<vmem>>, vector<1x4x256xf32>,
    %c0_14 = arith.constant 0 : index
    %c0_15 = arith.constant 0 : index
    %24 = vector.load %arg5[%c0_14, %c0_15] : memref<2x256xf32, #tpu.memory_space<vmem>>, vector<2x256xf32>
    %25 = vector.extract_strided_slice %24 {offsets = [0, 0], sizes = [1, 256], strides = [1, 1]} : vector<2x256xf32> to vector<1x256xf32>
    %26 = vector.broadcast %25 : vector<1x256xf32> to vector<4x256xf32>
    %27 = arith.mulf %20, %26 : vector<4x256xf32>
    %cst_16 = arith.constant dense<0.000000e+00> : vector<4xf32>
    %28 = vector.multi_reduction <add>, %27, %cst_16 [1] : vector<4x256xf32> to vector<4xf32>
    %29 = vector.shape_cast %28 : vector<4xf32> to vector<4x1xf32>
    %30 = vector.extract_strided_slice %24 {offsets = [1, 0], sizes = [1, 256], strides = [1, 1]} : vector<2x256xf32> to vector<1x256xf32>
    %31 = vector.broadcast %30 : vector<1x256xf32> to vector<4x256xf32>
    %32 = arith.mulf %20, %31 : vector<4x256xf32>
    %cst_17 = arith.constant dense<0.000000e+00> : vector<4xf32>
    %33 = vector.multi_reduction <add>, %32, %cst_17 [1] : vector<4x256xf32> to vector<4xf32>
    %34 = vector.shape_cast %33 : vector<4xf32> to vector<4x1xf32>
    %35 = tpu.concatenate %29, %34 in 1 : vector<4x1xf32>, vector<4x1xf32> -> vector<4x2xf32>
    %c0_18 = arith.constant 0 : index
    %c0_19 = arith.constant 0 : index
    %c0_20 = arith.constant 0 : index
    %36 = vector.load %arg7[%c0_18, %c0_19, %c0_20] : memref<1x4x2xf32, #tpu.memory_space<vmem>>, vector<1x4x2xf32>
    %37 = vector.shape_cast %36 : vector<1x4x2xf32> to vector<4x2xf32>
    %38 = vector.shape_cast %35 : vector<4x2xf32> to vector<1x4x2xf32>
    tpu.vector_store %arg7[%c0_18, %c0_19, %c0_20], %38 {strides = array<i32>} : memref<1x4x2xf32, #tpu.memory_space<vmem>>, vector<1x4x2xf32>,
    return
  }
  func.func @transform_0(%arg0: i32) -> (i32, i32) {
    %c0_i32 = arith.constant 0 : i32
    %c0_i32_0 = arith.constant 0 : i32
    return %c0_i32, %arg0 : i32, i32
  }
  func.func @transform_1(%arg0: i32) -> (i32, i32) {
    %c0_i32 = arith.constant 0 : i32
    %c0_i32_0 = arith.constant 0 : i32
    %c0_i32_1 = arith.constant 0 : i32
    return %c0_i32, %c0_i32_0 : i32, i32
  }
  func.func @transform_2(%arg0: i32) -> (i32, i32) {
    %c0_i32 = arith.constant 0 : i32
    %c0_i32_0 = arith.constant 0 : i32
    %c0_i32_1 = arith.constant 0 : i32
    return %c0_i32, %c0_i32_0 : i32, i32
  }
  func.func @transform_3(%arg0: i32) -> (i32, i32) {
    %c0_i32 = arith.constant 0 : i32
    %c0_i32_0 = arith.constant 0 : i32
    %c0_i32_1 = arith.constant 0 : i32
    return %c0_i32, %c0_i32_0 : i32, i32
  }
  func.func @transform_4(%arg0: i32) -> (i32, i32) {
    %c0_i32 = arith.constant 0 : i32
    %c0_i32_0 = arith.constant 0 : i32
    %c0_i32_1 = arith.constant 0 : i32
    return %c0_i32, %c0_i32_0 : i32, i32
  }
  func.func @transform_5(%arg0: i32) -> (i32, i32, i32) {
    %c0_i32 = arith.constant 0 : i32
    %c0_i32_0 = arith.constant 0 : i32
    %c0_i32_1 = arith.constant 0 : i32
    return %arg0, %c0_i32, %c0_i32_0 : i32, i32, i32
  }
  func.func @transform_6(%arg0: i32) -> (i32, i32, i32) {
    %c0_i32 = arith.constant 0 : i32
    %c0_i32_0 = arith.constant 0 : i32
    %c0_i32_1 = arith.constant 0 : i32
    return %arg0, %c0_i32, %c0_i32_0 : i32, i32, i32
  }
}

</mosaic_0001>

<bundles_post_ra>
// kernel: tpu_custom_call.1
= control target key start
LH: loop header
LB: loop body
LE: loop exit
PB: predicated region body
PF: predicated region fallthrough
CT: control target
= control target key end

     0   :  { %12 = vsyncpa [#allocation3], 0  ;;  %s862_s0 = inlined_call_operand.vmem [shape: bf16[4,512], index: 0, kind: input, shape index: {}]   ;;  %s863_s1 = inlined_call_operand.vmem [shape: bf16[8,4], index: 1, kind: input, shape index: {}]   ;;  %s864_s2 = inlined_call_operand.vmem [shape: f32[8,1], index: 2, kind: input, shape index: {}]   ;;  %s865_s3 = inlined_call_operand.vmem [shape: bf16[4,8], index: 3, kind: input, shape index: {}]   ;;  %s866_s4 = inlined_call_operand.vmem [shape: f32[2,256], index: 4, kind: input, shape index: {}]   ;;  %s867_s5 = inlined_call_operand.hbm [shape: f32[2,4,256], index: 5, kind: output, shape index: {0}]   ;;  %s868_s6 = inlined_call_operand.vmem [shape: f32[2,4,2], index: 6, kind: output, shape index: {1}]  }
   0x1   :  { %14 = vsyncpa [#allocation3 + $0x1], 0  ;;  %s742_s21 = smov 0   ;;  %s744_s22 = smov 0  }
   0x2   :  { %s746_s23 = smov 0   ;;  %s748_s24 = smov 0  }
   0x3 LB: > { %s763_s25 = sadd.s32 4294967295, %s703_s24   ;;  %s575_s26 = sadd.s32 4294967294, %s703_s24   ;;  %s703_s24 = sphi %s748_s24, %s874_s24   ;;  %s699_s23 = sphi %s746_s23, %s873_s23   ;;  %s695_s22 = sphi %s744_s22, %s872_s22   ;;  %s691_s21 = sphi %s742_s21, %s871_s21  }
   0x4   : > { %s767_s27 = sadd.s32 1, %s703_s24   ;;  %s137_s28 = sadd.s32 1, %s699_s23 }
   0x5   : > { %s134_s29 = ssub.s32 %s703_s24, %s767_s27  ;;  %p147_p0 = scmp.ne.s32.totalorder %s699_s23, %s695_s22 }
   0x6   : > { %p135_p1 = scmp.eq.s32.totalorder %s134_s29, 0  ;;  %p148_p2 = scmp.eq.s32.totalorder %s763_s25, 1 }
   0x7   : > { %p153_p3 = scmp.ne.s32.totalorder %s695_s22, %s691_s21  ;;  %p154_p4 = scmp.eq.s32.totalorder %s575_s26, 1 }
   0x8   : > { %s778_s30 = scalar_select %p135_p1, %s699_s23, %s137_s28  }
   0x9   : > { %p780_p5 = por %p148_p2, %p147_p0  ;;  %p784_p6 = por %p154_p4, %p153_p3 }
   0xa   : > { %p578_p7 = scmp.ge.s32.totalorder %s703_s24, 1  ;;  %p219_p8 = scmp.lt.s32.totalorder %s703_s24, 3 }
   0xc   : > { %p220_p9 = pnand %p578_p7, %p219_p8 }
   0xd   : > { %s580_s9 = sshll.u32 (!%p220_p9), %s763_s25, 1  ;;  %v705_v0 = vmov (!%p220_p9), 0   ;;  %v266_v1 = vld [vmem:[%s864_s2] sm:$0xff] (!%p220_p9)  ;;  %vm285_vm0 = vcmask (!%p220_p9), 1041408   ;;  %vm281_vm1 = vcmask (!%p220_p9), 31744   ;;  %vm342_vm2 = vcmask (!%p220_p9), 1043456  }
   0xe   : > { %223 = sbr.rel (%p220_p9) target bundleno = 939 (0x3ab), region = 40  ;;  %p254_p10 = scmp.lt.s32.totalorder (!%p220_p9), %s580_s9, 3  ;;  %324 = vmatprep.mubr.bf16.mxu0 (!%p220_p9), %v705_v0  ;;  %634 = vset.pattern.permute.xlu0 (!%p220_p9), %v705_v0  ;;  %v264_v5 = vld [vmem:[%s863_s1] sm:$0xf] (!%p220_p9)  ;;  %vm338_vm3 = vcmask (!%p220_p9), 64512   ;;  %v416_v36 = vlaneseq (!%p220_p9) }
   0xf   : > { %269 = vperm.xlu0 (!%p220_p9), %634, %v266_v1   ;;  %381 = vmatprep.mubr.bf16.mxu1 (!%p220_p9), %v705_v0  ;;  %v335_v18 = vld [vmem:[%s865_s3] sm:$0x3] (!%p220_p9)  ;;  %s244_s28 = sand.u32 (!%p220_p9), 1, %s695_s22   ;;  %s593_s10 = sshll.u32 (!%p220_p9), %s763_s25, 7 }
  0x10   : > { %v417_v37 = vshrl.u32 (!%p220_p9), %v416_v36, 7  ;;  %v414_v43 = vld [vmem:[%s866_s4] sm:$0xf] (!%p220_p9)  ;;  %s579_s29 = sshll.u32 (!%p220_p9), %s244_s28, 3  ;;  %s821_s13 = scalar_lea.hbm (!%p220_p9), %s867_s5, %s593_s10 }
  0x11   : > { %s706_s17 = smov (!%p220_p9), [#allocation2]  }
  0x12   : > { %v418_v39 = vsub.s32 (!%p220_p9), 0, %v417_v37  ;;  %v422_v40 = vsub.s32 (!%p220_p9), 2, %v417_v37  ;;  %v443_v41 = vsub.s32 (!%p220_p9), 1, %v417_v37  ;;  %v447_v42 = vsub.s32 (!%p220_p9), 3, %v417_v37  ;;  %s645_s18 = sshll.u32 (!%p220_p9), %s706_s17, 4  ;;  %s646_s18 = int_to_ptr.vmem [resolvable:$false] %s645_s18 }
  0x13   : > { %s647_s19 = scalar_lea.vmem (!%p220_p9), %s646_s18, 256 }
  0x14   : > { %v419_v44 = vrot.slane (!%p220_p9), %v414_v43, %v418_v39  ;;  %v423_v45 = vrot.slane (!%p220_p9), %v414_v43, %v422_v40  ;;  %v444_v46 = vrot.slane (!%p220_p9), %v414_v43, %v443_v41  ;;  %v448_v47 = vrot.slane (!%p220_p9), %v414_v43, %v447_v42 }
  0x15   : > { %s876_s9 = smov (!%p254_p10, %s580_s9), 3 }
  0x16   : > { %s581_s12 = sshll.u32 %s876_s9, 1  ;;  %v429_v48 = vrot.slane %v419_v44, %v418_v39  ;;  %v433_v49 = vrot.slane %v423_v45, %v418_v39  ;;  %v454_v50 = vrot.slane %v444_v46, %v443_v41  ;;  %v458_v51 = vrot.slane %v448_v47, %v443_v41  ;;  %s246_s9 = scalar_lea.vmem [#allocation2], %s579_s29 }
  0x17   : > { %s257_s15 = scalar_lea.vmem %s862_s0, %s581_s12  ;;  %s489_s14 = sshll.u32 %s246_s9, 4  ;;  %s490_s14 = int_to_ptr.vmem [resolvable:$true] %s489_s14 }
  0x18   : > { %v583_v2 = vld.sshfl [vmem:[%s257_s15] sm:$0x33 pattern:$0x76325410]  ;;  %s471_s15 = scalar_lea.sflag [#allocation3], %s244_s28  ;;  %s641_s16 = scalar_lea.vmem %s490_s14, 128 }
  0x19   : > { %v280_v3 = vcombine.high %v583_v2, %v583_v2  ;;  %v287_v4 = vsel %vm285_vm0, %v583_v2, 0  ;;  %p642_p11 = scmp.ne.s32.totalorder %s490_s14, %s641_s16  ;;  %p648_p0 = scmp.lt.s32.totalorder %s490_s14, %s646_s18 }
  0x1a   : > { %p649_p1 = scmp.lt.s32.totalorder %s647_s19, %s641_s16 }
  0x1b   : > { %584 = vmatprep.subr.msk.bf16.mxu0 %vm285_vm0, %v280_v3  ;;  %p643_p12 = pnand %p642_p11, %p780_p5 }
  0x1c   : > { %293 = vmatpush1.bf16.msra.mxu0 %v287_v4  ;;  %p650_p2 = por %p649_p1, %p648_p0 }
  0x1d   : > { %p644_p13 = pneg %p643_p12 }
  0x1f   : > { %585 = vmatmul.mubr.msk.bf16.vlgmr.msra.gmra.mrb[0].mxu0 %vm281_vm1, %v264_v5  ;;  %p651_p3 = pnand %p650_p2, %p644_p13 }
  0x8e   : > { %v270_v6 = vpop.permute.xlu0 %269 }
  0xf2   : > { %v326_v7 = vpop.f32.mrb[0].mxu0 }
  0xf3   : > { %v327_v8 = vadd.f32 %v326_v7, %v270_v6  ;;  %v328_v9 = vpop.f32.mrb[1].mxu0 }
  0xf4   : > { %v329_v10 = vadd.f32 %v328_v9, %v270_v6  ;;  %v330_v11 = vpop.f32.mrb[2].mxu0 }
  0xf5   : > { %v333_v12 = vmax.f32 %v327_v8, 0.0  ;;  %v331_v13 = vpop.f32.mrb[3].mxu0 }
  0xf6   : > { %v334_v14 = vmax.f32 %v329_v10, 0.0 }
  0xf7   : > { %v336_v15 = vpack.c.bf16 %v333_v12, %v333_v12 }
  0xf8   : > { %v337_v16 = vpack.c.bf16 %v334_v14, %v334_v14 }
  0xf9   : > { %v344_v17 = vsel %vm342_vm2, %v336_v15, 0 }
  0xfa   : > { %586 = vmatprep.subr.msk.bf16.mxu1 %vm342_vm2, %v337_v16 }
  0xfb   : > { %350 = vmatpush1.bf16.msra.mxu1 %v344_v17 }
  0xfe   : > { %587 = vmatmul.mubr.msk.bf16.vlgmr.msra.gmra.mrb[0].mxu1 %vm338_vm3, %v335_v18 }
 0x1d1   : > { %v383_v19 = vpop.f32.mrb[0].mxu1 }
 0x1d2   : > { %v390_v20 = vsel %vm342_vm2, %v383_v19, -inf  ;;  %v385_v21 = vpop.f32.mrb[1].mxu1 }
 0x1d3   : > { %v391_v22 = vsel %vm342_vm2, %v385_v21, -inf  ;;  %v387_v23 = vpop.f32.mrb[2].mxu1 }
 0x1d4   : > { %v388_v24 = vpop.f32.mrb[3].mxu1  ;;  %v392_v25 = vmax.f32 %v390_v20, %v391_v22 }
 0x1d6   : > { %393 = vmax.xlane.f32.xlu0 %v392_v25 }
 0x263   : > { %v394_v26 = vpop.xlane.xlu0 %393 }
 0x264   : > { %v395_v27 = vsub.f32 %v383_v19, %v394_v26  ;;  %v396_v28 = vsub.f32 %v385_v21, %v394_v26 }
 0x266   : > { %v397_v29 = vmul.f32 1.442695, %v395_v27  ;;  %v399_v30 = vmul.f32 1.442695, %v396_v28 }
 0x268   : > { %635 = vpow2.f32 %v397_v29 }
 0x269   : > { %637 = vpow2.f32 %v399_v30 }
 0x272   : > { %v636_v31 = vpop.eup %635 }
 0x273   : > { %v638_v32 = vpop.eup %637  ;;  %v401_v33 = vsel %vm342_vm2, %v636_v31, 0.0 }
 0x274   : > { %v402_v34 = vsel %vm342_vm2, %v638_v32, 0.0 }
 0x275   : > { %v403_v35 = vadd.f32 %v402_v34, %v401_v33 }
 0x277   : > { %404 = vadd.xlane.f32.xlu1 %v403_v35 }
 0x304   : > { %v405_v38 = vpop.xlane.xlu1 %404 }
 0x305   : > { %639 = vrcp.f32 %v405_v38 }
 0x30f   : > { %v640_v52 = vpop.eup %639 }
 0x310   : > { %v407_v53 = vmul.f32 %v640_v52, %v636_v31  ;;  %v408_v54 = vmul.f32 %v640_v52, %v638_v32 }
 0x312   : > { %v434_v55 = vmul.f32 %v429_v48, %v407_v53  ;;  %v435_v56 = vmul.f32 %v433_v49, %v408_v54  ;;  %v459_v57 = vmul.f32 %v454_v50, %v407_v53  ;;  %v460_v58 = vmul.f32 %v458_v51, %v408_v54 }
 0x313   : > { %v411_v59 = vcombine.low %v407_v53, %v408_v54 }
 0x314   : > { %v436_v60 = vsel %vm342_vm2, %v434_v55, 0.0  ;;  %v437_v61 = vsel %vm342_vm2, %v435_v56, 0.0  ;;  %v461_v63 = vsel %vm342_vm2, %v459_v57, 0.0  ;;  %v462_v0 = vsel %vm342_vm2, %v460_v58, 0.0 }
 0x315   : > { %v438_v62 = vadd.f32 %v437_v61, %v436_v60  ;;  %413 = vst [vmem:[%s246_s9] sm:$0xff] %v411_v59  ;;  %v463_v1 = vadd.f32 %v462_v0, %v461_v63 }
 0x317   : > { %439 = vadd.xlane.f32.xlu1 %v438_v62 }
 0x31b   : > { %464 = vadd.xlane.f32.xlu1 %v463_v1 }
 0x31c   : > { %654 = shalt.err (!%p651_p3)
}
 0x31d   : > { %s655_s20 = scalar_lea.hbm %s821_s13, 128  ;;  %s659_s29 = scalar_lea.hbm %s867_s5, 256 }
 0x31e   : > { %p656_p4 = scmp.ne.s32.totalorder %s821_s13, %s655_s20  ;;  %p660_p9 = scmp.lt.u32.totalorder %s821_s13, %s867_s5 }
 0x31f   : > { %p661_p10 = scmp.lt.u32.totalorder %s659_s29, %s655_s20  ;;  %p663_p12 = scmp.lt.u32.totalorder %s655_s20, %s821_s13 }
 0x320   : > { %p657_p7 = pnand %p656_p4, %p780_p5 }
 0x321   : > { %p662_p11 = por %p661_p10, %p660_p9 }
 0x322   : > { %p658_p8 = pneg %p657_p7 }
 0x323   : > { %p664_p13 = por %p663_p12, %p662_p11 }
 0x325   : > { %p665_p0 = pnand %p664_p13, %p658_p8 }
 0x327   : > { %668 = shalt.err (!%p665_p0)
}
 0x328   : > { %594 = dma.vmem_to_hbm [thread:$0]  (%p780_p5), %s490_s14, 128, %s821_s13, %s471_s15   ;;  %vm466_vm4 = vcmask 7168   ;;  %vm468_vm5 = vcmask 11264  }
 0x329   : > { %p259_p1 = scmp.lt.s32.totalorder %s763_s25, 1 }
 0x32b   : > { %s878_s25 = smov (!%p259_p1, %s763_s25), 1 }
 0x32c   : > { %s582_s11 = sshll.u32 %s878_s25, 2 }
 0x32d   : > { %s262_s17 = scalar_lea.vmem %s868_s6, %s582_s11 }
 0x3a4   : > { %v440_v2 = vpop.xlane.xlu1 %439 }
 0x3a8   : > { %v465_v3 = vpop.xlane.xlu1 %464 }
 0x3a9   : > { %v467_v4 = vsel %vm466_vm4, %v440_v2, %v465_v3 }
 0x3aa   : > { %469 = vst.msk [vmem:[%s262_s17] sm:$0xf] %vm468_vm5, %v467_v4 }
 0x3ab PF: > { %p600_p2 = scmp.ge.s32.totalorder %s703_s24, 2  ;;  %s504_s7 = sand.u32 1, %s691_s21  }
 0x3ac   : > { %s505_s13 = scalar_lea.sflag [#allocation3], %s504_s7 }
 0x3ad   : > { %p597_p5 = pnand %p600_p2, %p784_p6 }
 0x3af   : > { %686 = dma.done.wait (!%p597_p5), %s505_s13, 128  }
 0x3b0   : > { %688 = vsyncadd (!%p597_p5), %s505_s13, 4294967168  ;;  %p17_p3 = scmp.ge.s32.totalorder %s767_s27, 4   ;;  %s871_s21 = smov %s695_s22 }
 0x3b1   : > { %s872_s22 = smov %s699_s23  ;;  %s873_s23 = smov %s778_s30 }
 0x3b2   : > { %s874_s24 = smov %s767_s27  ;;  %19 = sbr.rel (!%p17_p3) target bundleno = 3 (0x3), region = 87 }
 0x3b9   :  { %517 = vsyncpa [#allocation3], 1 }
 0x3ba   :  { %519 = vsyncpa [#allocation3 + $0x1], 1 }

</bundles_post_ra>
